<compile_context>
chip_gen: v7x
topology: tpu7x:2x2x1
jax: 0.10.0
libtpu: 0.0.40
codegen_flags: <defaults>
</compile_context>

<pallas_src>
import jax
import jax.numpy as jnp
from jax.experimental import pallas as pl
from jax.experimental.pallas import tpu as pltpu


def _hbm_copy_kernel(obs_hbm, out_hbm, sem):
    # One contiguous HBM->HBM DMA: no VMEM round-trip, no vld/vst slots used,
    # no masked partial stores even for tiny / lane-sparse shapes.
    cp = pltpu.make_async_copy(obs_hbm, out_hbm, sem)
    cp.start()
    cp.wait()


def pallas_identity_copy(obs):
    """Materialize a fresh copy of `obs` with a single HBM->HBM DMA."""
    return pl.pallas_call(
        _hbm_copy_kernel,
        out_shape=jax.ShapeDtypeStruct(obs.shape, obs.dtype),
        grid_spec=pltpu.PrefetchScalarGridSpec(
            num_scalar_prefetch=0,
            grid=(1,),
            # Leave both operands in HBM; the kernel drives the DMA itself.
            in_specs=[pl.BlockSpec(memory_space=pl.ANY)],
            out_specs=pl.BlockSpec(memory_space=pl.ANY),
            scratch_shapes=[pltpu.SemaphoreType.DMA],
        ),
        compiler_params=pltpu.CompilerParams(
            dimension_semantics=("arbitrary",),
        ),
    )(obs)


def identity_encoder_forward(obs, detach=False, force_copy=False):
    """Pallas equivalent of IdentityEncoder.forward(obs).

    The PyTorch forward returns `obs` unchanged, so the default path performs
    zero data movement (no Pallas launch, no HBM traffic).  `detach` only
    affects autograd in PyTorch and has no effect on forward values, so it is
    ignored here.  Set force_copy=True to produce a distinct output buffer via
    the Pallas HBM->HBM DMA kernel.
    """
    # TODO(synk): `detach` is an autograd-only flag; gradient stopping would be
    # jax.lax.stop_gradient in a training setup, not a kernel concern.
    if force_copy:
        return pallas_identity_copy(obs)
    return obs


class IdentityEncoderPallas:
    """Mirror of the PyTorch IdentityEncoder module (no learnable params)."""

    def __init__(self, obs_shape, feature_dim, num_layers, num_filters, *args):
        assert len(obs_shape) == 1
        self.feature_dim = obs_shape[0]

    def forward(self, obs, detach=False):
        return identity_encoder_forward(obs, detach=detach)

    def copy_conv_weights_from(self, source):
        pass

    def log(self, L, step, log_freq):
        pass


if __name__ == "__main__":
    key = jax.random.PRNGKey(0)
    batch, feature_dim = 2, 32
    obs = jax.random.normal(key, (batch, feature_dim), dtype=jnp.float32)

    enc = IdentityEncoderPallas((feature_dim,), feature_dim=50,
                                num_layers=2, num_filters=32)

    # 1) Default (optimized) path: zero-copy identity — no kernel launch.
    out_fast = jax.block_until_ready(enc.forward(obs))
    assert out_fast.shape == obs.shape and out_fast.dtype == obs.dtype
    assert bool(jnp.all(out_fast == obs))

    # 2) Explicit Pallas copy path (run the kernel once on the tiny demo input).
    out_copy = jax.block_until_ready(pallas_identity_copy(obs))
    assert out_copy.shape == obs.shape and out_copy.dtype == obs.dtype
    assert bool(jnp.all(out_copy == obs))

    # 3) Same kernel on a modest lane-dense shape, to exercise a larger DMA.
    obs2 = jax.random.normal(jax.random.PRNGKey(0), (256, 128),
                             dtype=jnp.float32)
    out2 = jax.block_until_ready(pallas_identity_copy(obs2))
    assert bool(jnp.all(out2 == obs2))

    print("KERNEL_OK")
</pallas_src>

<mosaic_0001>
module attributes {stable_mosaic.version = 11 : i64} {
  func.func @_hbm_copy_kernel(%arg0: i32, %arg1: memref<2x32xf32, #tpu.memory_space<any>>, %arg2: memref<2x32xf32, #tpu.memory_space<any>>, %arg3: memref<!tpu.dma_semaphore, #tpu.memory_space<semaphore_mem>>) attributes {dimension_semantics = [#tpu.dimension_semantics<arbitrary>], iteration_bounds = array<i64: 1>, scalar_prefetch = 0 : i64, scratch_operands = 1 : i64, tpu.core_type = #tpu.core_type<tc>, window_params = [{}, {}]} {
    tpu.enqueue_dma source(%arg1 : memref<2x32xf32, #tpu.memory_space<any>>) target(%arg2 : memref<2x32xf32, #tpu.memory_space<any>>) target_semaphore(%arg3 : memref<!tpu.dma_semaphore, #tpu.memory_space<semaphore_mem>>)
    tpu.wait_dma2 semaphore(%arg3 : memref<!tpu.dma_semaphore, #tpu.memory_space<semaphore_mem>>) src(%arg1 : memref<2x32xf32, #tpu.memory_space<any>>) dst(%arg2 : memref<2x32xf32, #tpu.memory_space<any>>)
    return
  }
}

</mosaic_0001>

<bundles_post_ra>
// kernel: tpu_custom_call.1
= control target key start
LH: loop header
LB: loop body
LE: loop exit
PB: predicated region body
PF: predicated region fallthrough
CT: control target
= control target key end

     0   :  { %s34_s6 = smov [#allocation2]   ;;  %s35_s7 = smov [#allocation3]   ;;  %s53_s0 = inlined_call_operand.hbm [shape: f32[2,32], index: 0, kind: input, shape index: {}]   ;;  %s54_s1 = inlined_call_operand.hbm [shape: f32[2,32], index: 1, kind: output, shape index: {}]  }
   0x1   :  { %s36_s8 = smov 0  }
   0x2   :  { %18 = dma.general %s53_s0, 32, %s54_s1, %s34_s6, %s35_s7, [#allocation4], %s36_s8, 0  }
   0x3   :  { %32 = dma.done.wait [#allocation2], 32 }
   0x4   :  { %33 = vsyncadd [#allocation2], 4294967264 }
   0x5   :  { %22 = vsyncmov [#allocation2] }
   0x8   :  { %s23_s13 = vpop.sfrf %22 }
   0x9   :  { %p28_p0 = scmp.ne.s32.totalorder %s23_s13, 0 }
   0xb   :  { %27 = shalt.err (%p28_p0)  }

</bundles_post_ra>
